<compile_context>
chip_gen: v6e
topology: v6e:2x2x1
jax: 0.10.0
libtpu: 0.0.40
codegen_flags: <defaults>
</compile_context>

<pallas_src>
import jax
import jax.numpy as jnp
from jax.experimental import pallas as pl
from jax.experimental.pallas import tpu as pltpu


def _round_up(n, m):
    return ((n + m - 1) // m) * m


def classifier_kernel(x_ref, w1_ref, b1_ref, w2_ref, b2_ref, w3_ref, b3_ref, o_ref):
    # fc1 / fc2: f32 MXU matmuls with f32 accumulation; bias add + tanh on VPU/EUP.
    # (Dropout(0.5) is identity in eval mode.)
    h1 = jnp.tanh(
        jnp.dot(x_ref[...], w1_ref[...], preferred_element_type=jnp.float32)
        + b1_ref[...]
    )
    h2 = jnp.tanh(
        jnp.dot(h1, w2_ref[...], preferred_element_type=jnp.float32)
        + b2_ref[...]
    )
    # fc3 (out_features == 1): contract the hidden (lane) dims of w3 (1, H) and h2 (tb, H)
    # so the result lands directly as a lane-dense (1, tb) row -> unmasked stores.
    o = jnp.einsum("oh,bh->ob", w3_ref[...], h2, preferred_element_type=jnp.float32)
    o_ref[...] = (o + b3_ref[...]).astype(o_ref.dtype)


def classifier_forward(x, params, *, tile_b=8192):
    """x: [B, num_inputs] float32 -> [B, 1] float32 (eval-mode forward)."""
    w1, b1, w2, b2, w3, b3 = params
    B, num_inputs = x.shape
    hidden = w1.shape[1]

    # Balanced batch tiling:
    #   * num_tiles = ceil(B / tile_b), but at least 2 for large B (v7x megacore).
    #   * tb = round_up(ceil(B / num_tiles), 8): padding waste bounded by < 8*num_tiles
    #     rows (no rounding of B up to a whole large tile).
    num_tiles = max(1, pl.cdiv(B, max(int(tile_b), 8)))
    if num_tiles == 1 and B >= 256:
        num_tiles = 2  # keep >= 2 grid steps so both v7x TensorCores get work
    tb = _round_up(pl.cdiv(B, num_tiles), 8)
    num_tiles = pl.cdiv(B, tb)
    b_pad = num_tiles * tb
    if b_pad != B:
        # Only the small balanced-tile remainder (< 8 * num_tiles rows) is padded.
        x = jnp.pad(x, ((0, b_pad - B), (0, 0)))

    flops = 2 * b_pad * (num_inputs * hidden + hidden * hidden + hidden)
    transcendentals = 2 * b_pad * hidden
    bytes_accessed = (
        b_pad * num_inputs * 4                                       # x (f32)
        + (num_inputs * hidden + hidden * hidden + hidden) * 4       # weights (f32)
        + (2 * hidden + 1) * 4                                       # biases (f32)
        + b_pad * 4                                                  # output (f32)
    )

    out = pl.pallas_call(
        classifier_kernel,
        out_shape=jax.ShapeDtypeStruct((num_tiles, 1, tb), jnp.float32),
        grid=(num_tiles,),
        in_specs=[
            pl.BlockSpec((tb, num_inputs), lambda i: (i, 0)),      # x tile (pipelined)
            pl.BlockSpec((num_inputs, hidden), lambda i: (0, 0)),  # w1 (VMEM-resident)
            pl.BlockSpec((1, hidden), lambda i: (0, 0)),           # b1
            pl.BlockSpec((hidden, hidden), lambda i: (0, 0)),      # w2
            pl.BlockSpec((1, hidden), lambda i: (0, 0)),           # b2
            pl.BlockSpec((1, hidden), lambda i: (0, 0)),           # w3 (row, [1, hidden])
            pl.BlockSpec((1, 1), lambda i: (0, 0)),                # b3
        ],
        # Lane-dense output: each grid step writes one (1, tb) row (leading dim squeezed).
        out_specs=pl.BlockSpec((None, 1, tb), lambda i: (i, 0, 0)),
        compiler_params=pltpu.CompilerParams(
            dimension_semantics=("parallel",),
        ),
        cost_estimate=pl.CostEstimate(
            flops=flops,
            transcendentals=transcendentals,
            bytes_accessed=bytes_accessed,
        ),
    )(x, w1, b1, w2, b2, w3, b3)
    return out.reshape(b_pad, 1)[:B]


def init_params(key, num_inputs, hidden_dim):
    """Deterministic init mimicking nn.Linear defaults (uniform +-1/sqrt(fan_in)),
    with fc3.weight *= 0.1 and fc3.bias = 0, as in Classifier.__init__.
    fc1/fc2 weights are stored pre-transposed as [in, out] (one-time prepare step, no
    per-call layout/dtype work in the forward wrapper)."""
    k1, k2, k3, k4, k5 = jax.random.split(key, 5)

    def uinit(k, shape, fan_in):
        bound = 1.0 / jnp.sqrt(fan_in)
        return jax.random.uniform(k, shape, jnp.float32, -bound, bound)

    w1 = uinit(k1, (num_inputs, hidden_dim), num_inputs)
    b1 = uinit(k2, (1, hidden_dim), num_inputs)
    w2 = uinit(k3, (hidden_dim, hidden_dim), hidden_dim)
    b2 = uinit(k4, (1, hidden_dim), hidden_dim)
    w3 = uinit(k5, (1, hidden_dim), hidden_dim) * 0.1   # fc3 weight, natural [1, hidden]
    b3 = jnp.zeros((1, 1), jnp.float32)
    return (w1, b1, w2, b2, w3, b3)


def reference_forward(x, params):
    """Pure-JAX f32 reference (HIGHEST matmul precision)."""
    w1, b1, w2, b2, w3, b3 = params
    hp = jax.lax.Precision.HIGHEST
    h1 = jnp.tanh(jnp.dot(x, w1, precision=hp) + b1)
    h2 = jnp.tanh(jnp.dot(h1, w2, precision=hp) + b2)
    return jnp.dot(h2, w3.T, precision=hp) + b3


def _check(out, ref):
    assert out.shape == ref.shape, (out.shape, ref.shape)
    err = float(jnp.max(jnp.abs(out - ref)))
    # Tolerance accounts for possible matmul-algorithm differences between the in-kernel
    # MXU path and the XLA reference.
    assert jnp.allclose(out, ref, atol=2e-3, rtol=2e-3), err


if __name__ == "__main__":
    num_inputs, hidden_dim = 16, 32
    key = jax.random.PRNGKey(0)
    kx, kp, kx2, kx3, kx4 = jax.random.split(key, 5)
    params = init_params(kp, num_inputs, hidden_dim)

    # Small batch (single grid step, tiny lane-dense output row).
    x = jax.random.normal(kx, (8, num_inputs), jnp.float32)
    out = jax.block_until_ready(classifier_forward(x, params))
    _check(out, reference_forward(x, params))

    # Multi-tile batch with balanced tiles (520 rows -> 5 tiles of 104, no padding).
    x2 = jax.random.normal(kx2, (520, num_inputs), jnp.float32)
    out2 = jax.block_until_ready(classifier_forward(x2, params, tile_b=128))
    _check(out2, reference_forward(x2, params))

    # Larger batch with the default tile: forced 2-way split (v7x megacore path).
    x3 = jax.random.normal(kx3, (4096, num_inputs), jnp.float32)
    out3 = jax.block_until_ready(classifier_forward(x3, params))
    _check(out3, reference_forward(x3, params))

    # Ragged batch exercising the small balanced-remainder padding path
    # (130 rows -> 3 tiles of 48 -> pad 14 rows only).
    x4 = jax.random.normal(kx4, (130, num_inputs), jnp.float32)
    out4 = jax.block_until_ready(classifier_forward(x4, params, tile_b=64))
    _check(out4, reference_forward(x4, params))

    print("KERNEL_OK")
</pallas_src>

<mosaic_0001>
module attributes {stable_mosaic.version = 11 : i64} {
  func.func @classifier_kernel(%arg0: i32, %arg1: memref<8x16xf32, #tpu.memory_space<vmem>>, %arg2: memref<16x32xf32, #tpu.memory_space<vmem>>, %arg3: memref<1x32xf32, #tpu.memory_space<vmem>>, %arg4: memref<32x32xf32, #tpu.memory_space<vmem>>, %arg5: memref<1x32xf32, #tpu.memory_space<vmem>>, %arg6: memref<1x32xf32, #tpu.memory_space<vmem>>, %arg7: memref<1x1xf32, #tpu.memory_space<vmem>>, %arg8: memref<1x1x8xf32, #tpu.memory_space<vmem>>) attributes {dimension_semantics = [#tpu.dimension_semantics<parallel>], iteration_bounds = array<i64: 1>, scalar_prefetch = 0 : i64, scratch_operands = 0 : i64, tpu.core_type = #tpu.core_type<tc>, window_params = [{transform_indices = @transform_0, window_bounds = array<i64: 8, 16>}, {pipeline_mode = #tpu.pipeline_mode<synchronous>, transform_indices = @transform_1, window_bounds = array<i64: 16, 32>}, {pipeline_mode = #tpu.pipeline_mode<synchronous>, transform_indices = @transform_2, window_bounds = array<i64: 1, 32>}, {pipeline_mode = #tpu.pipeline_mode<synchronous>, transform_indices = @transform_3, window_bounds = array<i64: 32, 32>}, {pipeline_mode = #tpu.pipeline_mode<synchronous>, transform_indices = @transform_4, window_bounds = array<i64: 1, 32>}, {pipeline_mode = #tpu.pipeline_mode<synchronous>, transform_indices = @transform_5, window_bounds = array<i64: 1, 32>}, {pipeline_mode = #tpu.pipeline_mode<synchronous>, transform_indices = @transform_6, window_bounds = array<i64: 1, 1>}, {transform_indices = @transform_7, window_bounds = array<i64: 1, 1, 8>}]} {
    %c0 = arith.constant 0 : index
    %c0_0 = arith.constant 0 : index
    %0 = vector.load %arg1[%c0, %c0_0] : memref<8x16xf32, #tpu.memory_space<vmem>>, vector<8x16xf32>
    %c0_1 = arith.constant 0 : index
    %c0_2 = arith.constant 0 : index
    %1 = vector.load %arg2[%c0_1, %c0_2] : memref<16x32xf32, #tpu.memory_space<vmem>>, vector<16x32xf32>
    %cst = arith.constant dense<0.000000e+00> : vector<8x32xf32>
    %2 = tpu.matmul %0, %1, %cst {dimension_numbers = #tpu.dot_dimension_numbers<[1], [0], [0], [1], [0, 0, 1, 1], [], []>} : vector<8x16xf32>, vector<16x32xf32>, vector<8x32xf32> -> vector<8x32xf32>
    %c0_3 = arith.constant 0 : index
    %c0_4 = arith.constant 0 : index
    %3 = vector.load %arg3[%c0_3, %c0_4] : memref<1x32xf32, #tpu.memory_space<vmem>>, vector<1x32xf32>
    %4 = vector.broadcast %3 : vector<1x32xf32> to vector<8x32xf32>
    %5 = arith.addf %2, %4 : vector<8x32xf32>
    %6 = math.tanh %5 : vector<8x32xf32>
    %c0_5 = arith.constant 0 : index
    %c0_6 = arith.constant 0 : index
    %7 = vector.load %arg4[%c0_5, %c0_6] : memref<32x32xf32, #tpu.memory_space<vmem>>, vector<32x32xf32>
    %cst_7 = arith.constant dense<0.000000e+00> : vector<8x32xf32>
    %8 = tpu.matmul %6, %7, %cst_7 {dimension_numbers = #tpu.dot_dimension_numbers<[1], [0], [0], [1], [0, 0, 1, 1], [], []>} : vector<8x32xf32>, vector<32x32xf32>, vector<8x32xf32> -> vector<8x32xf32>
    %c0_8 = arith.constant 0 : index
    %c0_9 = arith.constant 0 : index
    %9 = vector.load %arg5[%c0_8, %c0_9] : memref<1x32xf32, #tpu.memory_space<vmem>>, vector<1x32xf32>
    %10 = vector.broadcast %9 : vector<1x32xf32> to vector<8x32xf32>
    %11 = arith.addf %8, %10 : vector<8x32xf32>
    %12 = math.tanh %11 : vector<8x32xf32>
    %c0_10 = arith.constant 0 : index
    %c0_11 = arith.constant 0 : index
    %13 = vector.load %arg6[%c0_10, %c0_11] : memref<1x32xf32, #tpu.memory_space<vmem>>, vector<1x32xf32>
    "tpu.trace_start"() <{level = 10 : i32, message = "oh,bh->ob"}> : () -> ()
    %cst_12 = arith.constant dense<0.000000e+00> : vector<1x8xf32>
    %14 = tpu.matmul %13, %12, %cst_12 {dimension_numbers = #tpu.dot_dimension_numbers<[1], [1], [0], [0], [0, 0, 1, 0], [], []>} : vector<1x32xf32>, vector<8x32xf32>, vector<1x8xf32> -> vector<1x8xf32>
    "tpu.trace_stop"() : () -> ()
    %c0_13 = arith.constant 0 : index
    %c0_14 = arith.constant 0 : index
    %15 = vector.load %arg7[%c0_13, %c0_14] : memref<1x1xf32, #tpu.memory_space<vmem>>, vector<1x1xf32>
    %16 = vector.broadcast %15 : vector<1x1xf32> to vector<1x8xf32>
    %17 = arith.addf %14, %16 : vector<1x8xf32>
    %c0_15 = arith.constant 0 : index
    %c0_16 = arith.constant 0 : index
    %c0_17 = arith.constant 0 : index
    %18 = vector.load %arg8[%c0_15, %c0_16, %c0_17] : memref<1x1x8xf32, #tpu.memory_space<vmem>>, vector<1x1x8xf32>
    %19 = vector.shape_cast %18 : vector<1x1x8xf32> to vector<1x8xf32>
    %20 = vector.shape_cast %17 : vector<1x8xf32> to vector<1x1x8xf32>
    tpu.vector_store %arg8[%c0_15, %c0_16, %c0_17], %20 {strides = array<i32>} : memref<1x1x8xf32, #tpu.memory_space<vmem>>, vector<1x1x8xf32>,
    return
  }
  func.func @transform_0(%arg0: i32) -> (i32, i32) {
    %c0_i32 = arith.constant 0 : i32
    %c0_i32_0 = arith.constant 0 : i32
    return %arg0, %c0_i32 : i32, i32
  }
  func.func @transform_1(%arg0: i32) -> (i32, i32) {
    %c0_i32 = arith.constant 0 : i32
    %c0_i32_0 = arith.constant 0 : i32
    %c0_i32_1 = arith.constant 0 : i32
    return %c0_i32, %c0_i32_0 : i32, i32
  }
  func.func @transform_2(%arg0: i32) -> (i32, i32) {
    %c0_i32 = arith.constant 0 : i32
    %c0_i32_0 = arith.constant 0 : i32
    %c0_i32_1 = arith.constant 0 : i32
    return %c0_i32, %c0_i32_0 : i32, i32
  }
  func.func @transform_3(%arg0: i32) -> (i32, i32) {
    %c0_i32 = arith.constant 0 : i32
    %c0_i32_0 = arith.constant 0 : i32
    %c0_i32_1 = arith.constant 0 : i32
    return %c0_i32, %c0_i32_0 : i32, i32
  }
  func.func @transform_4(%arg0: i32) -> (i32, i32) {
    %c0_i32 = arith.constant 0 : i32
    %c0_i32_0 = arith.constant 0 : i32
    %c0_i32_1 = arith.constant 0 : i32
    return %c0_i32, %c0_i32_0 : i32, i32
  }
  func.func @transform_5(%arg0: i32) -> (i32, i32) {
    %c0_i32 = arith.constant 0 : i32
    %c0_i32_0 = arith.constant 0 : i32
    %c0_i32_1 = arith.constant 0 : i32
    return %c0_i32, %c0_i32_0 : i32, i32
  }
  func.func @transform_6(%arg0: i32) -> (i32, i32) {
    %c0_i32 = arith.constant 0 : i32
    %c0_i32_0 = arith.constant 0 : i32
    %c0_i32_1 = arith.constant 0 : i32
    return %c0_i32, %c0_i32_0 : i32, i32
  }
  func.func @transform_7(%arg0: i32) -> (i32, i32, i32) {
    %c0_i32 = arith.constant 0 : i32
    %c0_i32_0 = arith.constant 0 : i32
    %c0_i32_1 = arith.constant 0 : i32
    return %arg0, %c0_i32, %c0_i32_0 : i32, i32, i32
  }
}

</mosaic_0001>

<bundles_post_ra>
// kernel: tpu_custom_call.1
= control target key start
LH: loop header
LB: loop body
LE: loop exit
PB: predicated region body
PF: predicated region fallthrough
CT: control target
= control target key end

     0   :  { %s556_s0 = inlined_call_operand.hbm [shape: f32[8,16], index: 0, kind: input, shape index: {}]   ;;  %s557_s1 = inlined_call_operand.hbm [shape: f32[16,32], index: 1, kind: input, shape index: {}]   ;;  %s558_s2 = inlined_call_operand.vmem [shape: f32[1,32], index: 2, kind: input, shape index: {}]   ;;  %s559_s3 = inlined_call_operand.hbm [shape: f32[32,32], index: 3, kind: input, shape index: {}]   ;;  %s560_s4 = inlined_call_operand.vmem [shape: f32[1,32], index: 4, kind: input, shape index: {}]   ;;  %s561_s5 = inlined_call_operand.vmem [shape: f32[1,32], index: 5, kind: input, shape index: {}]   ;;  %s562_s6 = inlined_call_operand.<no memory space> [shape: f32[1,1], index: 6, kind: input, shape index: {}]   ;;  %s563_s7 = inlined_call_operand.hbm [shape: f32[1,1,8], index: 7, kind: output, shape index: {}]  }
   0x1   :  { %v12_v0 = vstv %s562_s6 }
   0x2   :  { %13 = vst [vmem:[#allocation2] sm:$0x1] %v12_v0 }
   0x3   :  { %14 = vsyncpa [#allocation4], 0 }
   0x4   :  { %15 = vsyncpa [#allocation7], 0 }
   0x5   :  { %16 = vsyncpa [#allocation5], 0  ;;  %s483_s26 = smov [#allocation6]  }
   0x6   :  { %s32_s27 = sshll.u32 %s483_s26, 4  ;;  %s33_s27 = int_to_ptr.vmem [resolvable:$true] %s32_s27 }
   0x7   :  { %s405_s28 = scalar_lea.vmem %s33_s27, 256  ;;  %p410_p1 = scmp.lt.s32.totalorder %s33_s27, %s33_s27 }
   0x8   :  { %p406_p0 = scmp.ne.s32.totalorder %s33_s27, %s405_s28  ;;  %p411_p2 = scmp.lt.s32.totalorder %s405_s28, %s405_s28 }
   0xa   :  { %p412_p3 = por %p411_p2, %p410_p1 }
   0xc   :  { %p413_p4 = pnand %p412_p3, %p406_p0 }
   0xe   :  { %416 = shalt.err (!%p413_p4)
}
   0xf   :  { %s484_s29 = smov 128   ;;  %s485_s30 = smov 8  }
  0x10   :  { %38 = dma.hbm_to_vmem [thread:$0]  %s557_s1, 256, %s33_s27, [#allocation7], %s484_s29, %s484_s29, %s485_s30  }
  0x11   :  { %s486_s6 = smov [#allocation3]   ;;  %s487_s11 = smov [#allocation8]  }
  0x12   :  { %s23_s10 = sshll.u32 %s486_s6, 4  ;;  %s46_s12 = sshll.u32 %s487_s11, 4  ;;  %s24_s10 = int_to_ptr.vmem [resolvable:$true] %s23_s10  ;;  %s47_s12 = int_to_ptr.vmem [resolvable:$true] %s46_s12 }
  0x13   :  { %s425_s13 = scalar_lea.vmem %s24_s10, 128  ;;  %p430_p6 = scmp.lt.s32.totalorder %s24_s10, %s24_s10 }
  0x14   :  { %p426_p5 = scmp.ne.s32.totalorder %s24_s10, %s425_s13  ;;  %p431_p7 = scmp.lt.s32.totalorder %s425_s13, %s425_s13 }
  0x16   :  { %p432_p8 = por %p431_p7, %p430_p6 }
  0x18   :  { %p433_p9 = pnand %p432_p8, %p426_p5 }
  0x1a   :  { %436 = shalt.err (!%p433_p9)
}
  0x1b   :  { %26 = dma.hbm_to_vmem [thread:$0]  %s556_s0, 128, %s24_s10, [#allocation4]  }
  0x1c   :  { %s445_s16 = scalar_lea.vmem %s47_s12, 512  ;;  %p450_p11 = scmp.lt.s32.totalorder %s47_s12, %s47_s12 }
  0x1d   :  { %p446_p10 = scmp.ne.s32.totalorder %s47_s12, %s445_s16  ;;  %p451_p12 = scmp.lt.s32.totalorder %s445_s16, %s445_s16 }
  0x1f   :  { %p452_p13 = por %p451_p12, %p450_p11 }
  0x21   :  { %p453_p0 = pnand %p452_p13, %p446_p10 }
  0x23   :  { %456 = shalt.err (!%p453_p0)
}
  0x24   :  { %52 = dma.hbm_to_vmem [thread:$0]  %s559_s3, 512, %s47_s12, [#allocation7], %s484_s29, %s484_s29, %s485_s30  }
  0x25   :  { %477 = dma.done.wait [#allocation4], 128  }
  0x26   :  { %478 = vsyncadd [#allocation4], 4294967168 }
  0x27   :  { %479 = dma.done.wait [#allocation7], 768  }
  0x28   :  { %480 = vsyncadd [#allocation7], 4294966528  ;;  %v488_v1 = vmov 0.0   ;;  %vm489_vm0 = vmmov 0   ;;  %v70_v2 = vld [vmem:[#allocation6 + $0x8] sm:$0xff]  ;;  %v69_v3 = vld [vmem:[#allocation6] sm:$0xff]  ;;  %v246_v22 = vlaneseq }
  0x29   :  { %360 = vmatprep.subr.mxu0 %v488_v1  ;;  %364 = vmatprep.mubr.msk.f32.mxu0 %vm489_vm0, %v488_v1  ;;  %v68_v4 = vld [vmem:[#allocation3] sm:$0xff]  ;;  %vm78_vm1 = vcmask 130048   ;;  %v156_v5 = vld [vmem:[#allocation8 + $0x18] sm:$0xff]  ;;  %v155_v6 = vld [vmem:[#allocation8 + $0x10] sm:$0xff]  ;;  %vm164_vm2 = vcmask 261120   ;;  %v490_v15 = vmov 0  }
  0x2a   :  { %367 = vmatprep.subr.mxu1 %v488_v1  ;;  %375 = vmatprep.mubr.msk.f32.mxu1 %vm489_vm0, %v488_v1  ;;  %v154_v7 = vld [vmem:[#allocation8 + $0x8] sm:$0xff]  ;;  %v153_v8 = vld [vmem:[#allocation8] sm:$0xff]  ;;  %v247_v23 = vshrl.u32 %v246_v22, 7  ;;  %s491_s21 = smov [#allocation9]   ;;  %vm326_vm3 = vcmask 57344  }
  0x2b   :  { %361 = vmatpush3.msra.mxu0 %v70_v2  ;;  %368 = vmatpush3.msra.mxu1 %v156_v5  ;;  %v344_v9 = vld [vmem:[%s558_s2] ss:$0 sm:$0xff]  ;;  %s334_s22 = sshll.u32 %s491_s21, 4  ;;  %s335_s22 = int_to_ptr.vmem [resolvable:$true] %s334_s22 }
  0x2c   :  { %362 = vmatprep.subr.mxu0 %v488_v1  ;;  %369 = vmatprep.subr.mxu1 %v488_v1  ;;  %v240_v14 = vld [vmem:[#allocation2] sm:$0x1]  ;;  %v248_v24 = vsub.s32 0, %v247_v23  ;;  %s461_s23 = scalar_lea.vmem %s335_s22, 32  ;;  %p462_p2 = scmp.lt.s32.totalorder %s335_s22, %s335_s22 }
  0x2d   :  { %363 = vmatpush3.msra.mxu0 %v69_v3  ;;  %370 = vmatpush3.msra.mxu1 %v155_v6  ;;  %v346_v16 = vld [vmem:[%s560_s4] ss:$0 sm:$0xff]  ;;  %s457_s4 = scalar_lea.vmem %s335_s22, 16 }
  0x2e   :  { %365 = vmatmul.mubr.msk.f32.vlgmr.msra.gmra.mxu0 %vm78_vm1, %v68_v4  ;;  %378 = vmatprep.subr.mxu0 %v488_v1  ;;  %v239_v21 = vld [vmem:[%s561_s5] sm:$0x1]  ;;  %p458_p1 = scmp.ne.s32.totalorder %s335_s22, %s457_s4  ;;  %p463_p3 = scmp.lt.s32.totalorder %s461_s23, %s457_s4 }
  0x2f   :  { %380 = vmatprep.mubr.msk.f32.mxu0 %vm489_vm0, %v488_v1  ;;  %371 = vmatprep.subr.mxu1 %v488_v1 }
  0x30   :  { %372 = vmatpush3.msra.mxu1 %v154_v7  ;;  %392 = vset.pattern.permute.xlu0 %v490_v15  ;;  %p464_p4 = por %p463_p3, %p462_p2 }
  0x31   :  { %373 = vmatprep.subr.mxu1 %v488_v1  ;;  %243 = vperm.xlu0 %392, %v240_v14  }
  0x32   :  { %374 = vmatpush3.msra.mxu1 %v153_v8  ;;  %p465_p5 = pnand %p464_p4, %p458_p1 }
  0xac   :  { %v244_v25 = vpop.permute.xlu0 %243 }
  0xad   :  { %v249_v26 = vrot.slane %v244_v25, %v248_v24 }
  0xee   :  { %v148_v10 = vpop.f32.mrf.mxu0 }
  0xef   :  { %v149_v11 = vadd.f32 %v344_v9, %v148_v10 }
  0xf0   :  { %v366_v12 = vpop.f32.mrf.mxu0 }
  0xf1   :  { %393 = vtanh.f32 %v149_v11 }
  0xfe   :  { %v394_v13 = vpop.eup %393 }
  0xff   :  { %376 = vmatmul.mubr.msk.f32.vlgmr.msra.gmra.mxu1 %vm164_vm2, %v394_v13 }
 0x1bf   :  { %v234_v17 = vpop.f32.mrf.mxu1 }
 0x1c0   :  { %v235_v18 = vadd.f32 %v346_v16, %v234_v17 }
 0x1c1   :  { %v377_v19 = vpop.f32.mrf.mxu1 }
 0x1c2   :  { %395 = vtanh.f32 %v235_v18 }
 0x1cf   :  { %v396_v20 = vpop.eup %395 }
 0x1d0   :  { %379 = vmatpush3.xpose.msk.msra.mxu0 %vm164_vm2, %v396_v20 }
 0x1d3   :  { %381 = vmatmul.mubr.msk.f32.vlgmr.msra.gmra.mxu0 %vm164_vm2, %v239_v21 }
 0x293   :  { %v322_v27 = vpop.f32.mrf.mxu0 }
 0x294   :  { %v323_v28 = vadd.f32 %v322_v27, %v249_v26 }
 0x295   :  { %v382_v29 = vpop.f32.mrf.mxu0 }
 0x296   :  { %327 = vst.msk [vmem:[#allocation9] sm:$0x1] %vm326_vm3, %v323_v28 }
 0x297   :  { %468 = shalt.err (!%p465_p5)
}
 0x298   :  { %337 = dma.vmem_to_hbm [thread:$0]  %s335_s22, 16, %s563_s7, [#allocation5]  }
 0x299   :  { %481 = dma.done.wait [#allocation5], 16  }
 0x29a   :  { %482 = vsyncadd [#allocation5], 4294967280 }
 0x29b   :  { %341 = vsyncpa [#allocation4], 1 }
 0x29c   :  { %342 = vsyncpa [#allocation7], 1 }
 0x29d   :  { %343 = vsyncpa [#allocation5], 1 }

</bundles_post_ra>
